<compile_context>
chip_gen: v7x
topology: tpu7x:2x2x1
jax: 0.10.0
libtpu: 0.0.40
codegen_flags: <defaults>
</compile_context>

<pallas_src>
import math

import numpy as np
import jax
import jax.numpy as jnp
from jax import lax
from jax.experimental import pallas as pl
from jax.experimental.pallas import tpu as pltpu


_EMB_DIM = 128
_HALF_DIM = _EMB_DIM // 2
_FREQ_SCALE = math.log(10000.0) / (_HALF_DIM - 1)


# ---------------------------------------------------------------------------
# Reference-side sinusoidal timestep embedding (matches get_timestep_embedding)
# ---------------------------------------------------------------------------
def get_timestep_embedding(timesteps, embedding_dim=128):
    half_dim = embedding_dim // 2
    emb = math.log(10000.0) / (half_dim - 1)
    emb = jnp.exp(jnp.arange(half_dim, dtype=jnp.float32) * -emb)
    emb = timesteps.astype(jnp.float32)[:, None] * emb[None, :]
    return jnp.concatenate([jnp.sin(emb), jnp.cos(emb)], axis=1)  # (B, 128)


def _mm(a, b):
    # Full-f32 matmul for reference / offline weight folding.
    return jnp.dot(a, b, precision=lax.Precision.HIGHEST)


# ---------------------------------------------------------------------------
# Pallas kernel: fused temb + folded 2-layer MLP + lane-padded out head.
# One kernel serves both the conditional and unconditional paths (the wrapper
# selects which folded weights to pass).
# ---------------------------------------------------------------------------
def _mlp_kernel(
    xc_ref, t_ref,                        # activations: (TB, dsmall), (TB, 1)
    freqs_ref, phase_ref,                 # (1,128), (1,128) VMEM-resident constants
    wsm_ref, wt_ref, b1_ref,              # folded layer-1: (dsmall,256),(128,256),(1,256)
    w2_ref, b2_ref,                       # layer-2: (256,128),(1,128)
    wo_ref, bo_ref,                       # out head (lane-padded): (128,128),(1,128)
    o_ref,                                # (TB, 128)
):
    f32 = jnp.float32
    cdt = wt_ref.dtype

    # Sinusoidal timestep embedding with a single EUP sin; cos half is folded in
    # via phase = pi/2 (cos(x) = sin(x + pi/2)).  (TB,1)*(1,128) -> (TB,128) f32.
    temb = jnp.sin(t_ref[...] * freqs_ref[...] + phase_ref[...])

    h1 = (jnp.dot(xc_ref[...].astype(cdt), wsm_ref[...], preferred_element_type=f32)
          + jnp.dot(temb.astype(cdt), wt_ref[...], preferred_element_type=f32)
          + b1_ref[...])
    h1 = jnp.maximum(h1, 0.0)

    h2 = jnp.dot(h1.astype(cdt), w2_ref[...], preferred_element_type=f32) + b2_ref[...]
    h2 = jnp.maximum(h2, 0.0)

    o_ref[...] = (jnp.dot(h2.astype(cdt), wo_ref[...], preferred_element_type=f32)
                  + bo_ref[...]).astype(o_ref.dtype)


def _run(acts, weights, TB, out_dtype):
    Bp = acts[0].shape[0]
    grid = (Bp // TB,)
    act_specs = [pl.BlockSpec((TB, a.shape[1]), lambda i: (i, 0)) for a in acts]
    # Weights / biases / constants: full-array blocks, constant index_map ->
    # they stay VMEM-resident across all grid steps (no re-DMA).
    w_specs = [pl.BlockSpec(w.shape, lambda i: (0, 0)) for w in weights]
    return pl.pallas_call(
        _mlp_kernel,
        out_shape=jax.ShapeDtypeStruct((Bp, _EMB_DIM), out_dtype),
        grid_spec=pltpu.PrefetchScalarGridSpec(
            num_scalar_prefetch=0,
            grid=grid,
            in_specs=act_specs + w_specs,
            out_specs=pl.BlockSpec((TB, _EMB_DIM), lambda i: (i, 0)),
        ),
        compiler_params=pltpu.CompilerParams(
            dimension_semantics=("parallel",),     # batch tiles shard across v7x's 2 TCs
            vmem_limit_bytes=32 * 1024 * 1024,     # covers v5e's lower 16 MiB scoped default
        ),
    )(*acts, *weights)


# ---------------------------------------------------------------------------
# Parameter initialization (deterministic, PyTorch-Linear-style uniform init)
# ---------------------------------------------------------------------------
def _init_linear(key, fan_in, fan_out):
    k1, k2 = jax.random.split(key)
    bound = 1.0 / math.sqrt(fan_in)
    w = jax.random.uniform(k1, (fan_in, fan_out), jnp.float32, -bound, bound)
    b = jax.random.uniform(k2, (1, fan_out), jnp.float32, -bound, bound)
    return w, b


def init_params(key, input_dim, output_dim):
    ks = jax.random.split(key, 7)
    params = {
        "input_dim": input_dim,
        "output_dim": output_dim,
        "time_embed": _init_linear(ks[0], 128, 128),
        "input_proj": _init_linear(ks[1], input_dim, 128),
        "target_proj": _init_linear(ks[2], output_dim, 128),
        "mlp_with_cond_l1": _init_linear(ks[3], 384, 256),
        "mlp_with_cond_l2": _init_linear(ks[4], 256, 128),
        "mlp_without_cond_l1": _init_linear(ks[5], 256, 256),
        "mlp_without_cond_l2": _init_linear(ks[6], 256, 128),
    }
    params["out"] = _init_linear(jax.random.fold_in(key, 99), 128, output_dim)
    return params


# ---------------------------------------------------------------------------
# Offline param preparation: fold projections into layer-1, stack the small-K
# slabs (x [+ x_cond]) into one weight, pad the out head to 128 lanes, cast
# matmul weights to compute_dtype (biases stay f32).
# ---------------------------------------------------------------------------
def prepare_params(raw, compute_dtype=jnp.bfloat16):
    f32 = jnp.float32
    cdt = compute_dtype
    w_te, b_te = raw["time_embed"]
    w_ip, b_ip = raw["input_proj"]
    w_tp, b_tp = raw["target_proj"]
    w_o, b_o = raw["out"]
    out_dim = raw["output_dim"]

    def branch(l1, l2, with_cond):
        w1, b1 = l1
        w2, b2 = l2
        w1_x, w1_t = w1[0:128], w1[128:256]
        w1_c = w1[256:384] if with_cond else None
        d = {"wt": _mm(w_te.astype(f32), w1_t).astype(cdt),
             "w2": w2.astype(cdt),
             "b2": b2.astype(f32)}
        # Two variants of the folded small-K slab + fused bias, mirroring the
        # PyTorch shape-based dispatch (x via input_proj vs target_proj).
        for name, (pw, pb) in (("in", (w_ip, b_ip)), ("tg", (w_tp, b_tp))):
            wsm = _mm(pw.astype(f32), w1_x)
            bsm = _mm(pb, w1_x) + _mm(b_te, w1_t) + b1
            if with_cond:
                wsm = jnp.concatenate([wsm, _mm(w_ip.astype(f32), w1_c)], axis=0)
                bsm = bsm + _mm(b_ip, w1_c)
            d[name] = (wsm.astype(cdt), bsm.astype(f32))
        return d

    # Precomputed sinusoid constants: temb = sin(t * freqs + phase).
    k = jnp.arange(_HALF_DIM, dtype=f32)
    fr = jnp.exp(-_FREQ_SCALE * k)
    freqs = jnp.concatenate([fr, fr]).reshape(1, _EMB_DIM)
    phase = jnp.concatenate(
        [jnp.zeros((_HALF_DIM,), f32),
         jnp.full((_HALF_DIM,), 0.5 * jnp.pi, f32)]).reshape(1, _EMB_DIM)

    return {
        "input_dim": raw["input_dim"],
        "output_dim": out_dim,
        "compute_dtype": cdt,
        "freqs": freqs,
        "phase": phase,
        "cond": branch(raw["mlp_with_cond_l1"], raw["mlp_with_cond_l2"], True),
        "nocond": branch(raw["mlp_without_cond_l1"], raw["mlp_without_cond_l2"], False),
        # Lane-dense output head, zero-padded to 128 lanes.
        "wo": jnp.zeros((_EMB_DIM, _EMB_DIM), f32).at[:, :out_dim].set(w_o).astype(cdt),
        "bo": jnp.zeros((1, _EMB_DIM), f32).at[:, :out_dim].set(b_o),
    }


# ---------------------------------------------------------------------------
# Forward pass (mirrors ImprovedRegressionNet.forward, use_quantum=False)
# ---------------------------------------------------------------------------
def _choose_tile(B, compute_dtype):
    # Small batch: round up to sublane packing (32 for bf16 casts, 8 for f32).
    align = 32 if np.dtype(compute_dtype).itemsize < 4 else 8
    tb = ((B + align - 1) // align) * align
    if tb <= 256:
        return tb
    # Large batch: per-tile MXU work is tiny vs the ~0.35us grid-step overhead,
    # so use big tiles (multiples of 256, capped at 1024) while keeping >=2 grid
    # steps so the "parallel" batch axis can occupy both TensorCores on v7x.
    half = (B + 1) // 2
    tb = ((half + 255) // 256) * 256
    return min(tb, 1024)


def _pad_rows(a, Bp):
    return a if a.shape[0] == Bp else jnp.pad(a, ((0, Bp - a.shape[0]), (0, 0)))


def improved_regression_net_forward(prep, x, t, x_cond=None, tb=None,
                                    out_dtype=jnp.float32):
    if x.ndim == 1:
        x = x[None, :]
    if t.ndim == 0:
        t = t[None]
    x = x.astype(jnp.float32)
    B = x.shape[0]
    out_dim = prep["output_dim"]

    # Mirrors the PyTorch shape-based dispatch; if input_dim == output_dim the
    # noisy target routes through input_proj (same ambiguity as the original).
    variant = "in" if x.shape[1] == prep["input_dim"] else "tg"
    branch = prep["cond"] if x_cond is not None else prep["nocond"]
    wsm, bsm = branch[variant]

    # Merge the tiny-K activations into one matmul operand.
    xc = x if x_cond is None else jnp.concatenate([x, x_cond.astype(jnp.float32)], axis=1)

    TB = tb if tb is not None else _choose_tile(B, prep["compute_dtype"])
    Bp = pl.cdiv(B, TB) * TB

    acts = (_pad_rows(xc, Bp), _pad_rows(t.astype(jnp.float32).reshape(B, 1), Bp))
    weights = (prep["freqs"], prep["phase"], wsm, branch["wt"], bsm,
               branch["w2"], branch["b2"], prep["wo"], prep["bo"])
    out_pad = _run(acts, weights, TB, out_dtype)
    # Slice the lane-padded buffer down to the real payload (pass out_dtype=bf16
    # and/or consume the padded buffer directly if writeback bandwidth matters).
    return out_pad[:B, :out_dim]


# ---------------------------------------------------------------------------
# Pure-JAX reference (mirrors the PyTorch module exactly, full-f32 matmuls)
# ---------------------------------------------------------------------------
def reference_forward(params, x, t, x_cond=None):
    if x.ndim == 1:
        x = x[None, :]
    if t.ndim == 0:
        t = t[None]
    temb = get_timestep_embedding(t, 128)
    w_te, b_te = params["time_embed"]
    t_proj = _mm(temb, w_te) + b_te
    if x.shape[1] == params["input_dim"]:
        w_xp, b_xp = params["input_proj"]
    else:
        w_xp, b_xp = params["target_proj"]
    x_proj = _mm(x, w_xp) + b_xp
    if x_cond is not None:
        w_cp, b_cp = params["input_proj"]
        c_proj = _mm(x_cond, w_cp) + b_cp
        combined = jnp.concatenate([x_proj, t_proj, c_proj], axis=1)
        w1, b1 = params["mlp_with_cond_l1"]
        w2, b2 = params["mlp_with_cond_l2"]
    else:
        combined = jnp.concatenate([x_proj, t_proj], axis=1)
        w1, b1 = params["mlp_without_cond_l1"]
        w2, b2 = params["mlp_without_cond_l2"]
    h = jnp.maximum(_mm(combined, w1) + b1, 0.0)
    h = jnp.maximum(_mm(h, w2) + b2, 0.0)
    w_o, b_o = params["out"]
    return _mm(h, w_o) + b_o


# ---------------------------------------------------------------------------
if __name__ == "__main__":
    key = jax.random.PRNGKey(0)
    input_dim, output_dim, B = 16, 4, 2

    raw = init_params(key, input_dim, output_dim)
    prep_bf16 = prepare_params(raw)                 # bf16 matmul inputs (default)
    prep_f32 = prepare_params(raw, jnp.float32)     # pure-f32 path

    kx, kc = jax.random.split(jax.random.fold_in(key, 1234))
    x_noisy = jax.random.normal(kx, (B, output_dim), jnp.float32)   # noisy target -> target_proj
    x_cond = jax.random.normal(kc, (B, input_dim), jnp.float32)     # condition    -> input_proj
    t = jnp.array([3, 7], dtype=jnp.int32)

    ref_cond = reference_forward(raw, x_noisy, t, x_cond)
    ref_nocond = reference_forward(raw, x_noisy, t, None)

    # f32 compute path
    out_cond = jax.block_until_ready(improved_regression_net_forward(prep_f32, x_noisy, t, x_cond))
    out_nocond = jax.block_until_ready(improved_regression_net_forward(prep_f32, x_noisy, t, None))
    assert out_cond.shape == (B, output_dim)
    assert out_nocond.shape == (B, output_dim)
    assert jnp.allclose(out_cond, ref_cond, rtol=2e-3, atol=2e-3)
    assert jnp.allclose(out_nocond, ref_nocond, rtol=2e-3, atol=2e-3)

    # bf16 matmul-input path (default) — looser tolerance for bf16 MXU inputs
    out_cond_bf = jax.block_until_ready(improved_regression_net_forward(prep_bf16, x_noisy, t, x_cond))
    assert out_cond_bf.shape == (B, output_dim)
    assert jnp.allclose(out_cond_bf, ref_cond, rtol=5e-2, atol=5e-2)

    # multi-tile grid path: force >1 grid step with a small tile override
    B2 = 24
    kx2, kc2, kt2 = jax.random.split(jax.random.fold_in(key, 777), 3)
    x2 = jax.random.normal(kx2, (B2, output_dim), jnp.float32)
    c2 = jax.random.normal(kc2, (B2, input_dim), jnp.float32)
    t2 = jax.random.randint(kt2, (B2,), 0, 50, dtype=jnp.int32)
    out2 = jax.block_until_ready(improved_regression_net_forward(prep_f32, x2, t2, c2, tb=8))
    ref2 = reference_forward(raw, x2, t2, c2)
    assert out2.shape == (B2, output_dim)
    assert jnp.allclose(out2, ref2, rtol=2e-3, atol=2e-3)

    # large-batch path: exercises the big-tile (multiple-of-256, >=2 steps) auto-tiling
    B3 = 600
    kx3, kc3, kt3 = jax.random.split(jax.random.fold_in(key, 4242), 3)
    x3 = jax.random.normal(kx3, (B3, output_dim), jnp.float32)
    c3 = jax.random.normal(kc3, (B3, input_dim), jnp.float32)
    t3 = jax.random.randint(kt3, (B3,), 0, 1000, dtype=jnp.int32)
    out3 = jax.block_until_ready(improved_regression_net_forward(prep_bf16, x3, t3, c3))
    ref3 = reference_forward(raw, x3, t3, c3)
    assert out3.shape == (B3, output_dim)
    assert jnp.allclose(out3, ref3, rtol=5e-2, atol=5e-2)

    print("KERNEL_OK")
</pallas_src>

<mosaic_0001>
module attributes {stable_mosaic.version = 11 : i64} {
  func.func @_mlp_kernel(%arg0: i32, %arg1: memref<8x20xf32, #tpu.memory_space<vmem>>, %arg2: memref<8x1xf32, #tpu.memory_space<vmem>>, %arg3: memref<1x128xf32, #tpu.memory_space<vmem>>, %arg4: memref<1x128xf32, #tpu.memory_space<vmem>>, %arg5: memref<20x256xf32, #tpu.memory_space<vmem>>, %arg6: memref<128x256xf32, #tpu.memory_space<vmem>>, %arg7: memref<1x256xf32, #tpu.memory_space<vmem>>, %arg8: memref<256x128xf32, #tpu.memory_space<vmem>>, %arg9: memref<1x128xf32, #tpu.memory_space<vmem>>, %arg10: memref<128x128xf32, #tpu.memory_space<vmem>>, %arg11: memref<1x128xf32, #tpu.memory_space<vmem>>, %arg12: memref<8x128xf32, #tpu.memory_space<vmem>>) attributes {dimension_semantics = [#tpu.dimension_semantics<parallel>], iteration_bounds = array<i64: 1>, scalar_prefetch = 0 : i64, scratch_operands = 0 : i64, tpu.core_type = #tpu.core_type<tc>, window_params = [{transform_indices = @transform_0, window_bounds = array<i64: 8, 20>}, {transform_indices = @transform_1, window_bounds = array<i64: 8, 1>}, {pipeline_mode = #tpu.pipeline_mode<synchronous>, transform_indices = @transform_2, window_bounds = array<i64: 1, 128>}, {pipeline_mode = #tpu.pipeline_mode<synchronous>, transform_indices = @transform_3, window_bounds = array<i64: 1, 128>}, {pipeline_mode = #tpu.pipeline_mode<synchronous>, transform_indices = @transform_4, window_bounds = array<i64: 20, 256>}, {pipeline_mode = #tpu.pipeline_mode<synchronous>, transform_indices = @transform_5, window_bounds = array<i64: 128, 256>}, {pipeline_mode = #tpu.pipeline_mode<synchronous>, transform_indices = @transform_6, window_bounds = array<i64: 1, 256>}, {pipeline_mode = #tpu.pipeline_mode<synchronous>, transform_indices = @transform_7, window_bounds = array<i64: 256, 128>}, {pipeline_mode = #tpu.pipeline_mode<synchronous>, transform_indices = @transform_8, window_bounds = array<i64: 1, 128>}, {pipeline_mode = #tpu.pipeline_mode<synchronous>, transform_indices = @transform_9, window_bounds = array<i64: 128, 128>}, {pipeline_mode = #tpu.pipeline_mode<synchronous>, transform_indices = @transform_10, window_bounds = array<i64: 1, 128>}, {transform_indices = @transform_11, window_bounds = array<i64: 8, 128>}]} {
    %c0 = arith.constant 0 : index
    %c0_0 = arith.constant 0 : index
    %0 = vector.load %arg2[%c0, %c0_0] : memref<8x1xf32, #tpu.memory_space<vmem>>, vector<8x1xf32>
    %c0_1 = arith.constant 0 : index
    %c0_2 = arith.constant 0 : index
    %1 = vector.load %arg3[%c0_1, %c0_2] : memref<1x128xf32, #tpu.memory_space<vmem>>, vector<1x128xf32>
    %2 = vector.broadcast %0 : vector<8x1xf32> to vector<8x128xf32>
    %3 = vector.broadcast %1 : vector<1x128xf32> to vector<8x128xf32>
    %4 = arith.mulf %2, %3 : vector<8x128xf32>
    %c0_3 = arith.constant 0 : index
    %c0_4 = arith.constant 0 : index
    %5 = vector.load %arg4[%c0_3, %c0_4] : memref<1x128xf32, #tpu.memory_space<vmem>>, vector<1x128xf32>
    %6 = vector.broadcast %5 : vector<1x128xf32> to vector<8x128xf32>
    %7 = arith.addf %4, %6 : vector<8x128xf32>
    %8 = math.sin %7 : vector<8x128xf32>
    %c0_5 = arith.constant 0 : index
    %c0_6 = arith.constant 0 : index
    %9 = vector.load %arg1[%c0_5, %c0_6] : memref<8x20xf32, #tpu.memory_space<vmem>>, vector<8x20xf32>
    %c0_7 = arith.constant 0 : index
    %c0_8 = arith.constant 0 : index
    %10 = vector.load %arg5[%c0_7, %c0_8] : memref<20x256xf32, #tpu.memory_space<vmem>>, vector<20x256xf32>
    %cst = arith.constant dense<0.000000e+00> : vector<8x256xf32>
    %11 = tpu.matmul %9, %10, %cst {dimension_numbers = #tpu.dot_dimension_numbers<[1], [0], [0], [1], [0, 0, 1, 1], [], []>} : vector<8x20xf32>, vector<20x256xf32>, vector<8x256xf32> -> vector<8x256xf32>
    %c0_9 = arith.constant 0 : index
    %c0_10 = arith.constant 0 : index
    %12 = vector.load %arg6[%c0_9, %c0_10] : memref<128x256xf32, #tpu.memory_space<vmem>>, vector<128x256xf32>
    %cst_11 = arith.constant dense<0.000000e+00> : vector<8x256xf32>
    %13 = tpu.matmul %8, %12, %cst_11 {dimension_numbers = #tpu.dot_dimension_numbers<[1], [0], [0], [1], [0, 0, 1, 1], [], []>} : vector<8x128xf32>, vector<128x256xf32>, vector<8x256xf32> -> vector<8x256xf32>
    %14 = arith.addf %11, %13 : vector<8x256xf32>
    %c0_12 = arith.constant 0 : index
    %c0_13 = arith.constant 0 : index
    %15 = vector.load %arg7[%c0_12, %c0_13] : memref<1x256xf32, #tpu.memory_space<vmem>>, vector<1x256xf32>
    %16 = vector.broadcast %15 : vector<1x256xf32> to vector<8x256xf32>
    %17 = arith.addf %14, %16 : vector<8x256xf32>
    %cst_14 = arith.constant 0.000000e+00 : f32
    %18 = vector.broadcast %cst_14 : f32 to vector<8x256xf32>
    %19 = arith.maximumf %17, %18 : vector<8x256xf32>
    %c0_15 = arith.constant 0 : index
    %c0_16 = arith.constant 0 : index
    %20 = vector.load %arg8[%c0_15, %c0_16] : memref<256x128xf32, #tpu.memory_space<vmem>>, vector<256x128xf32>
    %cst_17 = arith.constant dense<0.000000e+00> : vector<8x128xf32>
    %21 = tpu.matmul %19, %20, %cst_17 {dimension_numbers = #tpu.dot_dimension_numbers<[1], [0], [0], [1], [0, 0, 1, 1], [], []>} : vector<8x256xf32>, vector<256x128xf32>, vector<8x128xf32> -> vector<8x128xf32>
    %c0_18 = arith.constant 0 : index
    %c0_19 = arith.constant 0 : index
    %22 = vector.load %arg9[%c0_18, %c0_19] : memref<1x128xf32, #tpu.memory_space<vmem>>, vector<1x128xf32>
    %23 = vector.broadcast %22 : vector<1x128xf32> to vector<8x128xf32>
    %24 = arith.addf %21, %23 : vector<8x128xf32>
    %cst_20 = arith.constant 0.000000e+00 : f32
    %25 = vector.broadcast %cst_20 : f32 to vector<8x128xf32>
    %26 = arith.maximumf %24, %25 : vector<8x128xf32>
    %c0_21 = arith.constant 0 : index
    %c0_22 = arith.constant 0 : index
    %27 = vector.load %arg10[%c0_21, %c0_22] : memref<128x128xf32, #tpu.memory_space<vmem>>, vector<128x128xf32>
    %cst_23 = arith.constant dense<0.000000e+00> : vector<8x128xf32>
    %28 = tpu.matmul %26, %27, %cst_23 {dimension_numbers = #tpu.dot_dimension_numbers<[1], [0], [0], [1], [0, 0, 1, 1], [], []>} : vector<8x128xf32>, vector<128x128xf32>, vector<8x128xf32> -> vector<8x128xf32>
    %c0_24 = arith.constant 0 : index
    %c0_25 = arith.constant 0 : index
    %29 = vector.load %arg11[%c0_24, %c0_25] : memref<1x128xf32, #tpu.memory_space<vmem>>, vector<1x128xf32>
    %30 = vector.broadcast %29 : vector<1x128xf32> to vector<8x128xf32>
    %31 = arith.addf %28, %30 : vector<8x128xf32>
    %c0_26 = arith.constant 0 : index
    %c0_27 = arith.constant 0 : index
    %32 = vector.load %arg12[%c0_26, %c0_27] : memref<8x128xf32, #tpu.memory_space<vmem>>, vector<8x128xf32>
    tpu.vector_store %arg12[%c0_26, %c0_27], %31 {strides = array<i32>} : memref<8x128xf32, #tpu.memory_space<vmem>>, vector<8x128xf32>,
    return
  }
  func.func @transform_0(%arg0: i32) -> (i32, i32) {
    %c0_i32 = arith.constant 0 : i32
    %c0_i32_0 = arith.constant 0 : i32
    return %arg0, %c0_i32 : i32, i32
  }
  func.func @transform_1(%arg0: i32) -> (i32, i32) {
    %c0_i32 = arith.constant 0 : i32
    %c0_i32_0 = arith.constant 0 : i32
    return %arg0, %c0_i32 : i32, i32
  }
  func.func @transform_2(%arg0: i32) -> (i32, i32) {
    %c0_i32 = arith.constant 0 : i32
    %c0_i32_0 = arith.constant 0 : i32
    %c0_i32_1 = arith.constant 0 : i32
    return %c0_i32, %c0_i32_0 : i32, i32
  }
  func.func @transform_3(%arg0: i32) -> (i32, i32) {
    %c0_i32 = arith.constant 0 : i32
    %c0_i32_0 = arith.constant 0 : i32
    %c0_i32_1 = arith.constant 0 : i32
    return %c0_i32, %c0_i32_0 : i32, i32
  }
  func.func @transform_4(%arg0: i32) -> (i32, i32) {
    %c0_i32 = arith.constant 0 : i32
    %c0_i32_0 = arith.constant 0 : i32
    %c0_i32_1 = arith.constant 0 : i32
    return %c0_i32, %c0_i32_0 : i32, i32
  }
  func.func @transform_5(%arg0: i32) -> (i32, i32) {
    %c0_i32 = arith.constant 0 : i32
    %c0_i32_0 = arith.constant 0 : i32
    %c0_i32_1 = arith.constant 0 : i32
    return %c0_i32, %c0_i32_0 : i32, i32
  }
  func.func @transform_6(%arg0: i32) -> (i32, i32) {
    %c0_i32 = arith.constant 0 : i32
    %c0_i32_0 = arith.constant 0 : i32
    %c0_i32_1 = arith.constant 0 : i32
    return %c0_i32, %c0_i32_0 : i32, i32
  }
  func.func @transform_7(%arg0: i32) -> (i32, i32) {
    %c0_i32 = arith.constant 0 : i32
    %c0_i32_0 = arith.constant 0 : i32
    %c0_i32_1 = arith.constant 0 : i32
    return %c0_i32, %c0_i32_0 : i32, i32
  }
  func.func @transform_8(%arg0: i32) -> (i32, i32) {
    %c0_i32 = arith.constant 0 : i32
    %c0_i32_0 = arith.constant 0 : i32
    %c0_i32_1 = arith.constant 0 : i32
    return %c0_i32, %c0_i32_0 : i32, i32
  }
  func.func @transform_9(%arg0: i32) -> (i32, i32) {
    %c0_i32 = arith.constant 0 : i32
    %c0_i32_0 = arith.constant 0 : i32
    %c0_i32_1 = arith.constant 0 : i32
    return %c0_i32, %c0_i32_0 : i32, i32
  }
  func.func @transform_10(%arg0: i32) -> (i32, i32) {
    %c0_i32 = arith.constant 0 : i32
    %c0_i32_0 = arith.constant 0 : i32
    %c0_i32_1 = arith.constant 0 : i32
    return %c0_i32, %c0_i32_0 : i32, i32
  }
  func.func @transform_11(%arg0: i32) -> (i32, i32) {
    %c0_i32 = arith.constant 0 : i32
    %c0_i32_0 = arith.constant 0 : i32
    return %arg0, %c0_i32 : i32, i32
  }
}

</mosaic_0001>

<bundles_post_ra>
// kernel: tpu_custom_call.1
= control target key start
LH: loop header
LB: loop body
LE: loop exit
PB: predicated region body
PF: predicated region fallthrough
CT: control target
= control target key end

     0   :  { %16 = vsyncpa [#allocation3], 0  ;;  %s1178_s0 = inlined_call_operand.vmem [shape: f32[8,20], index: 0, kind: input, shape index: {}]   ;;  %s1179_s1 = inlined_call_operand.vmem [shape: f32[8,1], index: 1, kind: input, shape index: {}]   ;;  %s1180_s2 = inlined_call_operand.vmem [shape: f32[1,128], index: 2, kind: input, shape index: {}]   ;;  %s1181_s3 = inlined_call_operand.vmem [shape: f32[1,128], index: 3, kind: input, shape index: {}]   ;;  %s1182_s4 = inlined_call_operand.hbm [shape: f32[20,256], index: 4, kind: input, shape index: {}]   ;;  %s1183_s5 = inlined_call_operand.hbm [shape: f32[128,256], index: 5, kind: input, shape index: {}]   ;;  %s1184_s6 = inlined_call_operand.vmem [shape: f32[1,256], index: 6, kind: input, shape index: {}]   ;;  %s1185_s7 = inlined_call_operand.hbm [shape: f32[256,128], index: 7, kind: input, shape index: {}]   ;;  %s1186_s8 = inlined_call_operand.vmem [shape: f32[1,128], index: 8, kind: input, shape index: {}]   ;;  %s1187_s9 = inlined_call_operand.hbm [shape: f32[128,128], index: 9, kind: input, shape index: {}]   ;;  %s1188_s10 = inlined_call_operand.vmem [shape: f32[1,128], index: 10, kind: input, shape index: {}]   ;;  %s1189_s11 = inlined_call_operand.hbm [shape: f32[8,128], index: 11, kind: output, shape index: {}]  }
   0x1   :  { %17 = vsyncpa [#allocation6], 0 }
   0x2   :  { %18 = vsyncpa [#allocation9], 0 }
   0x3   :  { %19 = vsyncpa [#allocation4], 0  ;;  %s987_s17 = smov [#allocation5]   ;;  %s988_s19 = smov [#allocation2]  }
   0x4   :  { %s45_s18 = sshll.u32 %s987_s17, 4  ;;  %s33_s20 = sshll.u32 %s988_s19, 4  ;;  %s46_s18 = int_to_ptr.vmem [resolvable:$true] %s45_s18  ;;  %s1066_s20 = int_to_ptr.vmem [resolvable:$true] %s33_s20 }
   0x5   :  { %s869_s23 = scalar_lea.hbm %s1183_s5, 4096 }
   0x6   :  { %p870_p0 = scmp.ne.s32.totalorder %s1183_s5, %s869_s23  ;;  %p873_p1 = scmp.lt.u32.totalorder %s869_s23, %s1183_s5 }
   0x8   :  { %p875_p2 = pnand %p873_p1, %p870_p0 }
   0xa   :  { %878 = shalt.err (!%p875_p2)
}
   0xb   :  { %s879_s28 = scalar_lea.vmem %s46_s18, 4096  ;;  %p884_p4 = scmp.lt.s32.totalorder %s46_s18, %s46_s18 }
   0xc   :  { %p880_p3 = scmp.ne.s32.totalorder %s46_s18, %s879_s28  ;;  %p885_p5 = scmp.lt.s32.totalorder %s879_s28, %s879_s28 }
   0xe   :  { %p886_p6 = por %p885_p5, %p884_p4 }
  0x10   :  { %p887_p7 = pnand %p886_p6, %p880_p3 }
  0x12   :  { %890 = shalt.err (!%p887_p7)
}
  0x13   :  { %s989_s29 = smov 256   ;;  %s990_s30 = smov 16  }
  0x14   :  { %51 = dma.hbm_to_vmem [thread:$0]  %s1183_s5, 4096, %s46_s18, [#allocation6], %s989_s29, %s989_s29, %s990_s30  }
  0x15   :  { %s891_s16 = scalar_lea.hbm %s1182_s4, 768 }
  0x16   :  { %p892_p8 = scmp.ne.s32.totalorder %s1182_s4, %s891_s16  ;;  %p895_p9 = scmp.lt.u32.totalorder %s891_s16, %s1182_s4 }
  0x18   :  { %p897_p10 = pnand %p895_p9, %p892_p8 }
  0x1a   :  { %900 = shalt.err (!%p897_p10)
}
  0x1b   :  { %s901_s23 = scalar_lea.vmem %s1066_s20, 768  ;;  %p906_p12 = scmp.lt.s32.totalorder %s1066_s20, %s1066_s20 }
  0x1c   :  { %p902_p11 = scmp.ne.s32.totalorder %s1066_s20, %s901_s23  ;;  %p907_p13 = scmp.lt.s32.totalorder %s901_s23, %s901_s23 }
  0x1e   :  { %p908_p0 = por %p907_p13, %p906_p12 }
  0x20   :  { %p909_p1 = pnand %p908_p0, %p902_p11 }
  0x22   :  { %912 = shalt.err (!%p909_p1)
}
  0x23   :  { %39 = dma.hbm_to_vmem [thread:$0]  %s1182_s4, 768, %s1066_s20, [#allocation3], %s989_s29, %s989_s29, %s990_s30  }
  0x24   :  { %s991_s24 = smov [#allocation7]   ;;  %s913_s28 = scalar_lea.hbm %s1185_s7, 4096 }
  0x25   :  { %s59_s25 = sshll.u32 %s991_s24, 4  ;;  %p914_p2 = scmp.ne.s32.totalorder %s1185_s7, %s913_s28  ;;  %s60_s25 = int_to_ptr.vmem [resolvable:$true] %s59_s25 }
  0x26   :  { %p917_p3 = scmp.lt.u32.totalorder %s913_s28, %s1185_s7 }
  0x28   :  { %p919_p4 = pnand %p917_p3, %p914_p2 }
  0x2a   :  { %922 = shalt.err (!%p919_p4)
}
  0x2b   :  { %s923_s16 = scalar_lea.vmem %s60_s25, 4096  ;;  %p928_p6 = scmp.lt.s32.totalorder %s60_s25, %s60_s25 }
  0x2c   :  { %p924_p5 = scmp.ne.s32.totalorder %s60_s25, %s923_s16  ;;  %p929_p7 = scmp.lt.s32.totalorder %s923_s16, %s923_s16 }
  0x2e   :  { %p930_p8 = por %p929_p7, %p928_p6 }
  0x30   :  { %p931_p9 = pnand %p930_p8, %p924_p5 }
  0x32   :  { %934 = shalt.err (!%p931_p9)
}
  0x33   :  { %s992_s4 = smov 128   ;;  %s993_s20 = smov 8  }
  0x34   :  { %65 = dma.hbm_to_vmem [thread:$0]  %s1185_s7, 4096, %s60_s25, [#allocation6], %s992_s4, %s992_s4, %s993_s20  }
  0x35   :  { %s994_s17 = smov [#allocation8]   ;;  %s935_s23 = scalar_lea.hbm %s1187_s9, 2048 }
  0x36   :  { %s73_s19 = sshll.u32 %s994_s17, 4  ;;  %p936_p10 = scmp.ne.s32.totalorder %s1187_s9, %s935_s23  ;;  %s74_s19 = int_to_ptr.vmem [resolvable:$true] %s73_s19 }
  0x37   :  { %p939_p11 = scmp.lt.u32.totalorder %s935_s23, %s1187_s9 }
  0x39   :  { %p941_p12 = pnand %p939_p11, %p936_p10 }
  0x3b   :  { %944 = shalt.err (!%p941_p12)
}
  0x3c   :  { %s945_s27 = scalar_lea.vmem %s74_s19, 2048  ;;  %p950_p0 = scmp.lt.s32.totalorder %s74_s19, %s74_s19 }
  0x3d   :  { %p946_p13 = scmp.ne.s32.totalorder %s74_s19, %s945_s27  ;;  %p951_p1 = scmp.lt.s32.totalorder %s945_s27, %s945_s27 }
  0x3f   :  { %p952_p2 = por %p951_p1, %p950_p0 }
  0x41   :  { %p953_p3 = pnand %p952_p2, %p946_p13 }
  0x43   :  { %956 = shalt.err (!%p953_p3)
}
  0x44   :  { %79 = dma.hbm_to_vmem [thread:$0]  %s1187_s9, 2048, %s74_s19, [#allocation9], %s992_s4, %s992_s4, %s993_s20  }
  0x45   :  { %979 = dma.done.wait [#allocation3], 768  }
  0x46   :  { %980 = vsyncadd [#allocation3], 4294966528 }
  0x47   :  { %981 = dma.done.wait [#allocation6], 8192  }
  0x48   :  { %982 = vsyncadd [#allocation6], 4294959104 }
  0x49   :  { %983 = dma.done.wait [#allocation9], 2048  }
  0x4a   :  { %984 = vsyncadd [#allocation9], 4294965248  ;;  %v995_v0 = vmov 0   ;;  %v94_v1 = vld [vmem:[%s1179_s1] sm:$0xff]  ;;  %v228_v2 = vld [vmem:[#allocation5 + $0x8] sm:$0xff]  ;;  %v996_v9 = vmov 0.0  }
  0x4b   :  { %864 = vset.pattern.permute.xlu0 %v995_v0  ;;  %v230_v3 = vld [vmem:[#allocation5 + $0x18] sm:$0xff]  ;;  %v227_v4 = vld [vmem:[#allocation5] sm:$0xff]  ;;  %v229_v6 = vld [vmem:[#allocation5 + $0x10] sm:$0xff]  ;;  %323 = vmatprep.mubr.f32.mxu0 %v996_v9  ;;  %vm334_vm13 = vcmask 1043456   ;;  %vm330_vm14 = vcmask 162816   ;;  %vm1004_vm15 = vmmov 0  }
  0x4c   :  { %98 = vperm.xlu0 %864, %v94_v1   ;;  %v747_v5 = vpack.c.bf16 %v230_v3, %v228_v2  ;;  %v232_v7 = vld [vmem:[#allocation5 + $0x28] sm:$0xff]  ;;  %v234_v8 = vld [vmem:[#allocation5 + $0x38] sm:$0xff]  ;;  %v749_v10 = vpack.c.bf16 %v229_v6, %v227_v4  ;;  %v231_v12 = vld [vmem:[#allocation5 + $0x20] sm:$0xff]  ;;  %s1005_s29 = smov [#allocation10]  }
  0x4d   :  { %v751_v11 = vpack.c.bf16 %v234_v8, %v232_v7  ;;  %v233_v13 = vld [vmem:[#allocation5 + $0x30] sm:$0xff]  ;;  %v236_v14 = vld [vmem:[#allocation5 + $0x48] sm:$0xff]  ;;  %v238_v15 = vld [vmem:[#allocation5 + $0x58] sm:$0xff]  ;;  %s638_s30 = sshll.u32 %s1005_s29, 4  ;;  %s639_s30 = int_to_ptr.vmem [resolvable:$true] %s638_s30 }
  0x4e   :  { %748 = vmatprep.subr.bf16.mxu0 %v747_v5  ;;  %v753_v16 = vpack.c.bf16 %v233_v13, %v231_v12  ;;  %v755_v17 = vpack.c.bf16 %v238_v15, %v236_v14  ;;  %v235_v18 = vld [vmem:[#allocation5 + $0x40] sm:$0xff]  ;;  %v237_v19 = vld [vmem:[#allocation5 + $0x50] sm:$0xff]  ;;  %v240_v20 = vld [vmem:[#allocation5 + $0x68] sm:$0xff]  ;;  %s957_s17 = scalar_lea.vmem %s639_s30, 128  ;;  %p962_p5 = scmp.lt.s32.totalorder %s639_s30, %s639_s30 }
  0x4f   :  { %750 = vmatpush1.bf16.msra.mxu0 %v749_v10  ;;  %v242_v21 = vld [vmem:[#allocation5 + $0x78] sm:$0xff]  ;;  %v757_v22 = vpack.c.bf16 %v237_v19, %v235_v18  ;;  %v239_v24 = vld [vmem:[#allocation5 + $0x60] sm:$0xff]  ;;  %v241_v25 = vld [vmem:[#allocation5 + $0x70] sm:$0xff]  ;;  %p958_p4 = scmp.ne.s32.totalorder %s639_s30, %s957_s17  ;;  %p963_p6 = scmp.lt.s32.totalorder %s957_s17, %s957_s17 }
  0x50   :  { %752 = vmatprep.subr.bf16.mxu0 %v751_v11  ;;  %v759_v23 = vpack.c.bf16 %v242_v21, %v240_v20  ;;  %v244_v26 = vld [vmem:[#allocation5 + $0x88] sm:$0xff]  ;;  %v246_v27 = vld [vmem:[#allocation5 + $0x98] sm:$0xff]  ;;  %v761_v28 = vpack.c.bf16 %v241_v25, %v239_v24  ;;  %v243_v30 = vld [vmem:[#allocation5 + $0x80] sm:$0xff] }
  0x51   :  { %v763_v29 = vpack.c.bf16 %v246_v27, %v244_v26  ;;  %v245_v31 = vld [vmem:[#allocation5 + $0x90] sm:$0xff]  ;;  %v248_v32 = vld [vmem:[#allocation5 + $0xa8] sm:$0xff]  ;;  %v250_v33 = vld [vmem:[#allocation5 + $0xb8] sm:$0xff]  ;;  %p964_p7 = por %p963_p6, %p962_p5 }
  0x52   :  { %v765_v34 = vpack.c.bf16 %v245_v31, %v243_v30  ;;  %v767_v35 = vpack.c.bf16 %v250_v33, %v248_v32  ;;  %v247_v36 = vld [vmem:[#allocation5 + $0xa0] sm:$0xff]  ;;  %v249_v37 = vld [vmem:[#allocation5 + $0xb0] sm:$0xff]  ;;  %v252_v38 = vld [vmem:[#allocation5 + $0xc8] sm:$0xff] }
  0x53   :  { %754 = vmatpush1.bf16.msra.mxu0 %v753_v16  ;;  %v254_v39 = vld [vmem:[#allocation5 + $0xd8] sm:$0xff]  ;;  %v769_v40 = vpack.c.bf16 %v249_v37, %v247_v36  ;;  %v251_v42 = vld [vmem:[#allocation5 + $0xc0] sm:$0xff]  ;;  %v253_v43 = vld [vmem:[#allocation5 + $0xd0] sm:$0xff]  ;;  %p965_p8 = pnand %p964_p7, %p958_p4 }
  0x54   :  { %756 = vmatprep.subr.bf16.mxu0 %v755_v17  ;;  %v771_v41 = vpack.c.bf16 %v254_v39, %v252_v38  ;;  %v256_v44 = vld [vmem:[#allocation5 + $0xe8] sm:$0xff]  ;;  %v258_v45 = vld [vmem:[#allocation5 + $0xf8] sm:$0xff]  ;;  %v773_v46 = vpack.c.bf16 %v253_v43, %v251_v42  ;;  %v255_v48 = vld [vmem:[#allocation5 + $0xe0] sm:$0xff] }
  0x55   :  { %v775_v47 = vpack.c.bf16 %v258_v45, %v256_v44  ;;  %v257_v49 = vld [vmem:[#allocation5 + $0xf0] sm:$0xff]  ;;  %v222_v50 = vld [vmem:[#allocation2 + $0x8] sm:$0xff]  ;;  %v224_v51 = vld [vmem:[#allocation2 + $0x18] sm:$0xff] }
  0x56   :  { %v777_v52 = vpack.c.bf16 %v257_v49, %v255_v48  ;;  %v779_v53 = vpack.c.bf16 %v224_v51, %v222_v50  ;;  %v444_v54 = vld [vmem:[#allocation7 + $0x80] sm:$0xff]  ;;  %v445_v55 = vld [vmem:[#allocation7 + $0x88] sm:$0xff]  ;;  %v446_v59 = vld [vmem:[#allocation7 + $0x90] sm:$0xff]  ;;  %v998_v48 = vmov 920167782  }
  0x57   :  { %758 = vmatpush1.bf16.msra.mxu0 %v757_v22  ;;  %v428_v56 = vld [vmem:[#allocation7] sm:$0xff]  ;;  %v783_v57 = vpack.c.bf16 %v445_v55, %v444_v54  ;;  %v429_v58 = vld [vmem:[#allocation7 + $0x8] sm:$0xff]  ;;  %v447_v60 = vld [vmem:[#allocation7 + $0x98] sm:$0xff]  ;;  %v1000_v54 = vmov 683565275  }
  0x58   :  { %760 = vmatprep.subr.bf16.mxu0 %v759_v23  ;;  %v785_v61 = vpack.c.bf16 %v429_v58, %v428_v56  ;;  %v787_v62 = vpack.c.bf16 %v447_v60, %v446_v59  ;;  %v430_v63 = vld [vmem:[#allocation7 + $0x10] sm:$0xff]  ;;  %v431_v0 = vld [vmem:[#allocation7 + $0x18] sm:$0xff]  ;;  %v448_v1 = vld [vmem:[#allocation7 + $0xa0] sm:$0xff]  ;;  %v1001_v56 = vmov 2475754826  }
  0x59   :  { %784 = vmatprep.subr.bf16.mxu1 %v783_v57  ;;  %v449_v2 = vld [vmem:[#allocation7 + $0xa8] sm:$0xff]  ;;  %v789_v3 = vpack.c.bf16 %v431_v0, %v430_v63  ;;  %v432_v5 = vld [vmem:[#allocation7 + $0x20] sm:$0xff]  ;;  %v450_v7 = vld [vmem:[#allocation7 + $0xb0] sm:$0xff]  ;;  %v1002_v59 = vmov 2131351028  }
  0x5a   :  { %786 = vmatpush3.bf16.msra.mxu1 %v785_v61  ;;  %v791_v4 = vpack.c.bf16 %v449_v2, %v448_v1  ;;  %v433_v6 = vld [vmem:[#allocation7 + $0x28] sm:$0xff]  ;;  %v451_v8 = vld [vmem:[#allocation7 + $0xb8] sm:$0xff]  ;;  %v434_v12 = vld [vmem:[#allocation7 + $0x30] sm:$0xff] }
  0x5b   :  { %762 = vmatpush1.bf16.msra.mxu0 %v761_v28  ;;  %788 = vmatprep.subr.bf16.mxu1 %v787_v62  ;;  %v793_v10 = vpack.c.bf16 %v433_v6, %v432_v5  ;;  %v795_v11 = vpack.c.bf16 %v451_v8, %v450_v7  ;;  %v435_v13 = vld [vmem:[#allocation7 + $0x38] sm:$0xff]  ;;  %v452_v14 = vld [vmem:[#allocation7 + $0xc0] sm:$0xff]  ;;  %v453_v15 = vld [vmem:[#allocation7 + $0xc8] sm:$0xff] }
  0x5c   :  { %764 = vmatprep.subr.bf16.mxu0 %v763_v29  ;;  %v797_v16 = vpack.c.bf16 %v435_v13, %v434_v12  ;;  %v799_v17 = vpack.c.bf16 %v453_v15, %v452_v14  ;;  %v436_v18 = vld [vmem:[#allocation7 + $0x40] sm:$0xff]  ;;  %v437_v19 = vld [vmem:[#allocation7 + $0x48] sm:$0xff]  ;;  %v454_v20 = vld [vmem:[#allocation7 + $0xd0] sm:$0xff] }
  0x5d   :  { %v455_v21 = vld [vmem:[#allocation7 + $0xd8] sm:$0xff]  ;;  %v801_v22 = vpack.c.bf16 %v437_v19, %v436_v18  ;;  %v438_v24 = vld [vmem:[#allocation7 + $0x50] sm:$0xff]  ;;  %v456_v26 = vld [vmem:[#allocation7 + $0xe0] sm:$0xff] }
  0x5e   :  { %790 = vmatpush3.bf16.msra.mxu1 %v789_v3  ;;  %v803_v23 = vpack.c.bf16 %v455_v21, %v454_v20  ;;  %v439_v25 = vld [vmem:[#allocation7 + $0x58] sm:$0xff]  ;;  %v457_v27 = vld [vmem:[#allocation7 + $0xe8] sm:$0xff]  ;;  %v649_v30 = vld [vmem:[%s1180_s2] ss:$0 sm:$0xff] }
  0x5f   :  { %766 = vmatpush1.bf16.msra.mxu0 %v765_v34  ;;  %792 = vmatprep.subr.bf16.mxu1 %v791_v4  ;;  %v805_v28 = vpack.c.bf16 %v439_v25, %v438_v24  ;;  %v807_v29 = vpack.c.bf16 %v457_v27, %v456_v26  ;;  %v650_v31 = vld [vmem:[%s1181_s3] ss:$0 sm:$0xff] }
  0x60   :  { %768 = vmatprep.subr.bf16.mxu0 %v767_v35 }
  0x62   :  { %794 = vmatpush3.bf16.msra.mxu1 %v793_v10 }
  0x63   :  { %770 = vmatpush1.bf16.msra.mxu0 %v769_v40  ;;  %796 = vmatprep.subr.bf16.mxu1 %v795_v11 }
  0x64   :  { %772 = vmatprep.subr.bf16.mxu0 %v771_v41 }
  0x66   :  { %798 = vmatpush3.bf16.msra.mxu1 %v797_v16 }
  0x67   :  { %774 = vmatpush1.bf16.msra.mxu0 %v773_v46  ;;  %800 = vmatprep.subr.bf16.mxu1 %v799_v17  ;;  %v997_v46 = vmov 2102212464  }
  0x68   :  { %776 = vmatprep.subr.bf16.mxu0 %v775_v47 }
  0x6a   :  { %802 = vmatpush3.bf16.msra.mxu1 %v801_v22 }
  0x6b   :  { %778 = vmatpush1.bf16.msra.mxu0 %v777_v52  ;;  %804 = vmatprep.subr.bf16.mxu1 %v803_v23  ;;  %v999_v52 = vmov 1326507024  }
  0x6c   :  { %780 = vmatprep.subr.bf16.mxu0 %v779_v53 }
  0x6e   :  { %806 = vmatpush3.bf16.msra.mxu1 %v805_v28 }
  0x6f   :  { %808 = vmatprep.subr.bf16.mxu1 %v807_v29 }
  0xcb   :  { %v99_v32 = vpop.permute.xlu0 %98 }
  0xcc   :  { %v107_v33 = vmul.f32 %v649_v30, %v99_v32 }
  0xce   :  { %v1131_v34 = vadd.f32 %v650_v31, %v107_v33 }
  0xd0   :  { %v119_v35 = vand.u32 2139095040, %v1131_v34  ;;  %v116_v36 = vand.u32 2147483647, %v1131_v34  ;;  %vm118_vm7 = vcmp.lt.s32.totalorder %v1131_v34, 0  ;;  %vm208_vm12 = vweird.f32 %v1131_v34 }
  0xd2   :  { %v120_v37 = vshrl.u32 %v119_v35, 23  ;;  %v123_v39 = vand.u32 8388607, %v116_v36  ;;  %vm117_vm8 = vcmp.le.f32.partialorder %v116_v36, 0.7853982 }
  0xd4   :  { %v651_v38 = vadd.s32 4294967169, %v120_v37  ;;  %v124_v42 = vor.u32 8388608, %v123_v39 }
  0xd6   :  { %v126_v40 = vadd.s32 1, %v651_v38  ;;  %v164_v50 = vshll.u32 %v124_v42, 8 }
  0xd8   :  { %vm127_vm0 = vcmp.gt.s32.totalorder %v126_v40, 0 }
  0xd9   :  { %v128_v41 = vsel %vm127_vm0, %v126_v40, 0 }
  0xda   :  { %v130_v43 = vand.u32 31, %v128_v41  ;;  %v129_v44 = vshrl.u32 %v128_v41, 5 }
  0xdc   :  { %v131_v45 = vsub.s32 32, %v130_v43  ;;  %v142_v47 = vshll.u32 %v997_v46, %v130_v43  ;;  %v145_v49 = vshll.u32 %v998_v48, %v130_v43  ;;  %v133_v55 = vshll.u32 %v1000_v54, %v130_v43 }
  0xdd   :  { %v136_v58 = vshll.u32 %v1001_v56, %v130_v43  ;;  %v139_v61 = vshll.u32 %v1002_v59, %v130_v43  ;;  %vm151_vm1 = vcmp.lt.s32.totalorder %v129_v44, 4  ;;  %vm148_vm2 = vcmp.lt.s32.totalorder %v129_v44, 1 }
  0xde   :  { %v143_v51 = vshrl.u32 %v998_v48, %v131_v45  ;;  %v146_v53 = vshrl.u32 %v999_v52, %v131_v45  ;;  %v134_v57 = vshrl.u32 %v1001_v56, %v131_v45  ;;  %v137_v60 = vshrl.u32 %v1002_v59, %v131_v45 }
  0xdf   :  { %v140_v62 = vshrl.u32 %v997_v46, %v131_v45  ;;  %v132_v2 = vshrl.u32 %v1000_v54, %v131_v45  ;;  %vm149_vm3 = vcmp.lt.s32.totalorder %v129_v44, 2  ;;  %vm150_vm4 = vcmp.lt.s32.totalorder %v129_v44, 3 }
  0xe0   :  { %v144_v63 = vor.u32 %v143_v51, %v142_v47  ;;  %v147_v0 = vor.u32 %v146_v53, %v145_v49  ;;  %v135_v1 = vor.u32 %v134_v57, %v133_v55  ;;  %v138_v3 = vor.u32 %v137_v60, %v136_v58  ;;  %v221_v60 = vld [vmem:[#allocation2] sm:$0xff] }
  0xe1   :  { %v141_v4 = vor.u32 %v140_v62, %v139_v61  ;;  %v223_v61 = vld [vmem:[#allocation2 + $0x10] sm:$0xff] }
  0xe2   :  { %v157_v5 = vsel %vm151_vm1, %v144_v63, 920167782  ;;  %v161_v6 = vsel %vm151_vm1, %v147_v0, 1326507024  ;;  %v156_v8 = vsel %vm148_vm2, %v135_v1, %v138_v3  ;;  %v152_v12 = vsel %vm148_vm2, %v132_v2, %v135_v1 }
  0xe3   :  { %v153_v7 = vsel %vm151_vm1, %v141_v4, 2102212464  ;;  %v158_v10 = vsel %vm150_vm4, %v141_v4, %v157_v5  ;;  %v160_v11 = vsel %vm148_vm2, %v138_v3, %v141_v4  ;;  %v162_v15 = vsel %vm150_vm4, %v144_v63, %v161_v6  ;;  %v225_v4 = vld [vmem:[#allocation2 + $0x20] sm:$0xf]  ;;  %v440_v6 = vld [vmem:[#allocation7 + $0x60] sm:$0xff] }
  0xe4   :  { %v154_v13 = vsel %vm150_vm4, %v138_v3, %v153_v7  ;;  %v159_v14 = vsel %vm149_vm3, %v156_v8, %v158_v10  ;;  %v163_v16 = vsel %vm149_vm3, %v160_v11, %v162_v15  ;;  %v781_v0 = vpack.c.bf16 %v223_v61, %v221_v60  ;;  %v226_v3 = vld [vmem:[#allocation2 + $0x28] sm:$0xf]  ;;  %v220_v5 = vld [vmem:[%s1178_s0] sm:$0xff]  ;;  %v441_v7 = vld [vmem:[#allocation7 + $0x68] sm:$0xff] }
  0xe5   :  { %v1137_v17 = vmul.u32.u64.low %v164_v50, %v159_v14  ;;  %v1138_v18 = vmul.u32.u64.high %v164_v50, %v159_v14, %v1137_v17  ;;  %v1140_v19 = vmul.u32.u64.low %v164_v50, %v163_v16  ;;  %v1141_v20 = vmul.u32.u64.high %v164_v50, %v163_v16, %v1140_v19  ;;  %v458_v8 = vld [vmem:[#allocation7 + $0xf0] sm:$0xff]  ;;  %v459_v10 = vld [vmem:[#allocation7 + $0xf8] sm:$0xff] }
  0xe6   :  { %v155_v21 = vsel %vm149_vm3, %v152_v12, %v154_v13  ;;  %v811_v11 = vpack.c.bf16 %v459_v10, %v458_v8  ;;  %v442_v12 = vld [vmem:[#allocation7 + $0x70] sm:$0xff]  ;;  %v443_v13 = vld [vmem:[#allocation7 + $0x78] sm:$0xff]  ;;  %v1003_v15 = vmov 0.0|0.0   ;;  %v414_v16 = vlaneseq }
  0xe7   :  { %v174_v22 = vadd.s32 1, %v1138_v18  ;;  %v171_v23 = vmul.u32 %v164_v50, %v155_v21  ;;  %vm173_vm5 = vc.u32 %v1141_v20, %v1137_v17  ;;  %v172_v37 = vadd.s32 %v1137_v17, %v1141_v20  ;;  %v412_v19 = vld [vmem:[%s1184_s6] sm:$0x3] }
  0xe8   :  { %v813_v14 = vpack.c.bf16 %v443_v13, %v442_v12  ;;  %v415_v17 = vshrl.u32 %v414_v16, 7  ;;  %v659_v61 = vld [vmem:[%s1188_s10] ss:$0 sm:$0xff] }
  0xe9   :  { %v175_v24 = vsel %vm173_vm5, %v174_v22, %v1138_v18 }
  0xea   :  { %v176_v25 = vadd.s32 %v175_v24, %v171_v23  ;;  %v416_v18 = vsub.s32 0, %v415_v17  ;;  %v420_v20 = vsub.s32 1, %v415_v17 }
  0xec   :  { %v177_v26 = vadd.s32 536870912, %v176_v25  ;;  %v417_v21 = vrot.slane %v412_v19, %v416_v18  ;;  %v421_v22 = vrot.slane %v412_v19, %v420_v20 }
  0xee   :  { %v178_v27 = vshrl.u32 %v177_v26, 30  ;;  %v538_v26 = vld [vmem:[#allocation8] sm:$0xff] }
  0xf0   :  { %v179_v28 = vshll.u32 %v178_v27, 30  ;;  %v202_v49 = vsub.s32 4, %v178_v27 }
  0xf2   :  { %v180_v29 = vsub.s32 %v176_v25, %v179_v28  ;;  %v203_v52 = vsel %vm118_vm7, %v202_v49, %v178_v27  ;;  %v539_v27 = vld [vmem:[#allocation8 + $0x8] sm:$0xff]  ;;  %v550_v49 = vld [vmem:[#allocation8 + $0x60] sm:$0xff] }
  0xf3   :  { %v205_v54 = vsel %vm117_vm8, 0, %v203_v52  ;;  %v552_v52 = vld [vmem:[#allocation8 + $0x70] sm:$0xff] }
  0xf4   :  { %v182_v30 = vsub.s32 0, %v180_v29  ;;  %v209_v55 = vadd.s32 3, %v205_v54 }
  0xf6   :  { %v652_v31 = vmin.u32 %v182_v30, %v180_v29  ;;  %v210_v56 = vand.u32 3, %v209_v55  ;;  %v816_v30 = vpack.c.bf16 %v539_v27, %v538_v26 }
  0xf8   :  { %v184_v32 = vclz %v652_v31  ;;  %vm215_vm9 = vcmp.eq.s32.totalorder %v210_v56, 2  ;;  %vm212_vm10 = vcmp.eq.s32.totalorder %v210_v56, 0  ;;  %vm211_vm11 = vcmp.lt.s32.totalorder %v210_v56, 2  ;;  %v658_v56 = vld [vmem:[%s1186_s8] ss:$0 sm:$0xff] }
  0xfa   :  { %v653_v33 = vadd.s32 4294967294, %v184_v32  ;;  %v540_v32 = vld [vmem:[#allocation8 + $0x10] sm:$0xff] }
  0xfc   :  { %vm654_vm6 = vcmp.lt.s32.totalorder %v653_v33, 0 }
  0xfd   :  { %v187_v35 = vsel %vm654_vm6, 0, %v653_v33  ;;  %v541_v33 = vld [vmem:[#allocation8 + $0x18] sm:$0xff] }
  0xfe   :  { %v188_v38 = vsub.s32 32, %v187_v35  ;;  %v192_v39 = vsub.s32 4294967266, %v187_v35  ;;  %v189_v40 = vshll.u32 %v180_v29, %v187_v35  ;;  %v819_v35 = vpack.c.bf16 %v541_v33, %v540_v32 }
 0x100   :  { %v190_v41 = vshrl.u32 %v172_v37, %v188_v38  ;;  %v193_v42 = vadd.s32 127, %v192_v39  ;;  %v542_v37 = vld [vmem:[#allocation8 + $0x20] sm:$0xff]  ;;  %v543_v38 = vld [vmem:[#allocation8 + $0x28] sm:$0xff] }
 0x101   :  { %v822_v39 = vpack.c.bf16 %v543_v38, %v542_v37 }
 0x102   :  { %v191_v43 = vor.u32 %v190_v41, %v189_v40  ;;  %v194_v44 = vshll.u32 %v193_v42, 23  ;;  %v544_v40 = vld [vmem:[#allocation8 + $0x30] sm:$0xff]  ;;  %v545_v41 = vld [vmem:[#allocation8 + $0x38] sm:$0xff] }
 0x103   :  { %v825_v42 = vpack.c.bf16 %v545_v41, %v544_v40 }
 0x104   :  { %v195_v45 = vor.u32 4788187, %v194_v44  ;;  %v198_v47 = vcvt.s32.f32 %v191_v43  ;;  %v546_v43 = vld [vmem:[#allocation8 + $0x40] sm:$0xff]  ;;  %v547_v44 = vld [vmem:[#allocation8 + $0x48] sm:$0xff] }
 0x106   :  { %v196_v46 = vand.u32 2147483647, %v195_v45  ;;  %v828_v45 = vpack.c.bf16 %v547_v44, %v546_v43 }
 0x108   :  { %v199_v48 = vmul.f32 %v198_v47, %v196_v46  ;;  %v548_v46 = vld [vmem:[#allocation8 + $0x50] sm:$0xff]  ;;  %v549_v47 = vld [vmem:[#allocation8 + $0x58] sm:$0xff] }
 0x10a   :  { %v200_v50 = vxor.u32 2147483648, %v199_v48 }
 0x10c   :  { %v201_v51 = vsel %vm118_vm7, %v200_v50, %v199_v48  ;;  %v831_v48 = vpack.c.bf16 %v549_v47, %v548_v46  ;;  %v551_v50 = vld [vmem:[#allocation8 + $0x68] sm:$0xff] }
 0x10d   :  { %v204_v53 = vsel %vm117_vm8, %v1131_v34, %v201_v51  ;;  %v809_v34 = vpack.c.bf16 %v441_v7, %v440_v6  ;;  %v834_v51 = vpack.c.bf16 %v551_v50, %v550_v49 }
 0x10e   :  { %865 = vcosq.f32 %v204_v53 }
 0x10f   :  { %867 = vsinq.f32 %v204_v53  ;;  %810 = vmatpush3.bf16.msra.mxu1 %v809_v34  ;;  %v553_v53 = vld [vmem:[#allocation8 + $0x78] sm:$0xff] }
 0x110   :  { %812 = vmatprep.subr.bf16.mxu1 %v811_v11  ;;  %v837_v54 = vpack.c.bf16 %v553_v53, %v552_v52 }
 0x113   :  { %814 = vmatpush3.bf16.msra.mxu1 %v813_v14 }
 0x114   :  { %815 = vmatprep.subr.bf16.mxu1 %v1003_v15 }
 0x118   :  { %v866_v57 = vpop.eup %865 }
 0x119   :  { %v868_v58 = vpop.eup %867  ;;  %v216_v59 = vxor.u32 2147483648, %v866_v57 }
 0x11a   :  { %v213_v62 = vxor.u32 2147483648, %v868_v58 }
 0x11b   :  { %v217_v63 = vsel %vm215_vm9, %v216_v59, %v868_v58 }
 0x11c   :  { %v214_v36 = vsel %vm212_vm10, %v866_v57, %v213_v62 }
 0x11d   :  { %v218_v1 = vsel %vm211_vm11, %v214_v36, %v217_v63 }
 0x11e   :  { %v219_v2 = vsel %vm208_vm12, nan, %v218_v1 }
 0x11f   :  { %324 = vmatmul.mubr.f32.vlgmr.msra.gmra.mrb[0].mxu0 %v219_v2 }
 0x120   :  { %782 = vmatpush1.bf16.msra.mxu0 %v781_v0  ;;  %405 = vmatprep.mubr.f32.mxu0 %v996_v9 }
 0x121   :  { %655 = vmatprep.subr.msk.mxu0 %vm334_vm13, %v226_v3 }
 0x124   :  { %656 = vmatpush1.msk.msra.mxu0 %vm334_vm13, %v225_v4 }
 0x127   :  { %657 = vmatmul.mubr.msk.f32.vlgmr.msra.gmra.mrb[0].mxu0 %vm330_vm14, %v220_v5 }
 0x1fa   :  { %v407_v23 = vpop.f32.mrb[0].mxu0 }
 0x1fb   :  { %v424_v24 = vadd.f32 %v417_v21, %v407_v23  ;;  %v409_v25 = vpop.f32.mrb[1].mxu0 }
 0x1fc   :  { %v425_v28 = vadd.f32 %v421_v22, %v409_v25 }
 0x1fd   :  { %v426_v31 = vmax.f32 %v424_v24, 0.0 }
 0x1fe   :  { %v427_v29 = vmax.f32 %v425_v28, 0.0 }
 0x200   :  { %531 = vmatprep.mubr.f32.mxu1 %v427_v29 }
 0x201   :  { %532 = vmatmul.mubr.f32.vlgmr.msra.gmra.mrb[0].mxu1 %v426_v31 }
 0x202   :  { %817 = vmatpush3.bf16.msra.mxu1 %v816_v30  ;;  %744 = vmatprep.mubr.msk.f32.mxu1 %vm1004_vm15, %v996_v9 }
 0x203   :  { %818 = vmatprep.subr.bf16.mxu1 %v1003_v15 }
 0x206   :  { %820 = vmatpush3.bf16.msra.mxu1 %v819_v35 }
 0x207   :  { %821 = vmatprep.subr.bf16.mxu1 %v1003_v15 }
 0x20a   :  { %823 = vmatpush3.bf16.msra.mxu1 %v822_v39 }
 0x20b   :  { %824 = vmatprep.subr.bf16.mxu1 %v1003_v15 }
 0x20e   :  { %826 = vmatpush3.bf16.msra.mxu1 %v825_v42 }
 0x20f   :  { %827 = vmatprep.subr.bf16.mxu1 %v1003_v15 }
 0x212   :  { %829 = vmatpush3.bf16.msra.mxu1 %v828_v45 }
 0x213   :  { %830 = vmatprep.subr.bf16.mxu1 %v1003_v15 }
 0x216   :  { %832 = vmatpush3.bf16.msra.mxu1 %v831_v48 }
 0x217   :  { %833 = vmatprep.subr.bf16.mxu1 %v1003_v15 }
 0x21a   :  { %835 = vmatpush3.bf16.msra.mxu1 %v834_v51 }
 0x21b   :  { %836 = vmatprep.subr.bf16.mxu1 %v1003_v15 }
 0x21e   :  { %838 = vmatpush3.bf16.msra.mxu1 %v837_v54 }
 0x2d4   :  { %v692_v55 = vpop.f32.mrb[0].mxu1 }
 0x2d5   :  { %v693_v57 = vpop.f32.mrb[1].mxu1 }
 0x2d6   :  { %v694_v58 = vadd.f32 %v693_v57, %v692_v55 }
 0x2d8   :  { %v534_v59 = vadd.f32 %v694_v58, %v658_v56 }
 0x2da   :  { %v537_v60 = vmax.f32 %v534_v59, 0.0 }
 0x2dc   :  { %745 = vmatmul.mubr.f32.vlgmr.msra.gmra.mrb[2].mxu1 %v537_v60 }
 0x3af   :  { %v627_v62 = vpop.f32.mrb[2].mxu1 }
 0x3b0   :  { %v628_v63 = vadd.f32 %v659_v61, %v627_v62  ;;  %v746_v36 = vpop.f32.mrb[3].mxu1 }
 0x3b2   :  { %631 = vst [vmem:[#allocation10] sm:$0xff] %v628_v63 }
 0x3b3   :  { %968 = shalt.err (!%p965_p8)
}
 0x3b4   :  { %s969_s21 = scalar_lea.hbm %s1189_s11, 128 }
 0x3b5   :  { %p970_p9 = scmp.ne.s32.totalorder %s1189_s11, %s969_s21  ;;  %p973_p10 = scmp.lt.u32.totalorder %s969_s21, %s1189_s11 }
 0x3b7   :  { %p975_p11 = pnand %p973_p10, %p970_p9 }
 0x3b9   :  { %978 = shalt.err (!%p975_p11)
}
 0x3ba   :  { %641 = dma.vmem_to_hbm [thread:$0]  %s639_s30, 128, %s1189_s11, [#allocation4]  }
 0x3bb   :  { %985 = dma.done.wait [#allocation4], 128  }
 0x3bc   :  { %986 = vsyncadd [#allocation4], 4294967168 }
 0x3bd   :  { %645 = vsyncpa [#allocation3], 1 }
 0x3be   :  { %646 = vsyncpa [#allocation6], 1 }
 0x3bf   :  { %647 = vsyncpa [#allocation9], 1 }
 0x3c0   :  { %648 = vsyncpa [#allocation4], 1 }

</bundles_post_ra>
